<compile_context>
chip_gen: v5e
topology: v5e:2x2
jax: 0.10.0
libtpu: 0.0.40
codegen_flags: <defaults>
</compile_context>

<pallas_src>
import numpy as np
import jax
import jax.numpy as jnp
from jax.experimental import pallas as pl
from jax.experimental.pallas import tpu as pltpu


_LANES = 128
_GROUP = 4                               # qubits per sample
_SAMPLES_PER_ROW = _LANES // _GROUP      # 32
_DEFAULT_BLOCK_ROWS = 4096               # 4096*128*4 B = 2 MiB per buffer


def _round_up(a, b):
    return (a + b - 1) // b * b


def quantum_layer_kernel(x_ref, cw_ref, o_ref):
    # x_ref : (br, 128) packed angles; lane l -> sample l//4, qubit p = l%4
    # cw_ref: (1, 128)  cos(weights) tiled to the same lane pattern
    z = jnp.cos(x_ref[...]) * cw_ref[...]            # z_{g,p} per lane (dense VPU/EUP)

    # Intra-group products via lane rotations (pltpu.roll == jnp.roll semantics:
    # roll(a, s)[l] = a[l - s]).  Group boundaries never leak into selected lanes.
    zm1 = pltpu.roll(z, 1, axis=1)                   # z[l-1]
    zm2 = pltpu.roll(z, 2, axis=1)                   # z[l-2]
    c1 = z * zm1                                     # at p>=1: z_p * z_{p-1}
    c2 = c1 * zm2                                    # at p>=2: z_p * z_{p-1} * z_{p-2}
    c3 = c1 * pltpu.roll(c1, 2, axis=1)              # at p==3: z0*z1*z2*z3
    n123 = pltpu.roll(c2, _LANES - 3, axis=1)        # c2[l+3]; at p==0: z1*z2*z3

    # Per-lane position masks (tiny (1,128) vregs, broadcast over sublanes).
    lane = jax.lax.broadcasted_iota(jnp.int32, (1, _LANES), 1)
    p = lane & 3
    m0 = (p == 0).astype(z.dtype)
    m1 = (p == 1).astype(z.dtype)
    m2 = (p == 2).astype(z.dtype)
    m3 = (p == 3).astype(z.dtype)

    # One dense, full-lane store per tile.
    o_ref[...] = n123 * m0 + c1 * m1 + c2 * m2 + c3 * m3


def quantum_layer(x, weights, *, block_rows=_DEFAULT_BLOCK_ROWS):
    """x: (B, 4), weights: (1, 4)  ->  (B, 4) float32 of <Z_i> expectation values."""
    x = jnp.asarray(x, jnp.float32)
    w = jnp.asarray(weights, jnp.float32)
    if w.shape != (1, _GROUP):
        raise ValueError(
            "closed form only valid for defining_layers == 1; expected weights of "
            f"shape (1, 4), got {w.shape}")
    if x.ndim != 2 or x.shape[1] != _GROUP:
        raise ValueError(f"expected x of shape (B, 4), got {x.shape}")
    block_rows = max(8, _round_up(int(block_rows), 8))
    B = x.shape[0]

    # Hoisted batch-invariant constant: cos(w) tiled across the 128 lanes.
    cw_tiled = jnp.tile(jnp.cos(w), (1, _SAMPLES_PER_ROW))          # (1, 128)

    # Pack to the lane-dense (R_pad, 128) layout (row-major reshape is free).
    R = pl.cdiv(_GROUP * B, _LANES)                                  # rows needed
    br = _round_up(R, 8) if R <= block_rows else block_rows          # block rows
    R_pad = _round_up(R, br)
    B_pad = R_pad * _SAMPLES_PER_ROW
    if B_pad != B:
        # cos(0) = 1 in the padded tail; padded rows are sliced off below.
        x = jnp.pad(x, ((0, B_pad - B), (0, 0)))
    xp = x.reshape(R_pad, _LANES)

    out = pl.pallas_call(
        quantum_layer_kernel,
        out_shape=jax.ShapeDtypeStruct((R_pad, _LANES), jnp.float32),
        grid=(R_pad // br,),
        in_specs=[
            pl.BlockSpec((br, _LANES), lambda i: (i, 0)),
            pl.BlockSpec((1, _LANES), lambda i: (0, 0)),   # resident constant
        ],
        out_specs=pl.BlockSpec((br, _LANES), lambda i: (i, 0)),
        compiler_params=pltpu.CompilerParams(
            dimension_semantics=("parallel",)),              # v7x: shard over 2 TCs
    )(xp, cw_tiled)

    return out.reshape(B_pad, _GROUP)[:B]


# ---------------- reference: full 16-dim statevector simulation (numpy) ----------------
def _ref_quantum(x, w):
    def rx(t):
        return np.array([[np.cos(t / 2), -1j * np.sin(t / 2)],
                         [-1j * np.sin(t / 2), np.cos(t / 2)]])

    def ry(t):
        return np.array([[np.cos(t / 2), -np.sin(t / 2)],
                         [np.sin(t / 2), np.cos(t / 2)]])

    I2 = np.eye(2)

    def single(op, wire):
        out = np.array([[1.0 + 0j]])
        for i in range(4):
            out = np.kron(out, op if i == wire else I2)
        return out

    def cnot(c, t):
        U = np.zeros((16, 16))
        for b in range(16):
            bits = [(b >> (3 - i)) & 1 for i in range(4)]
            if bits[c] == 1:
                bits[t] ^= 1
            b2 = sum(bit << (3 - i) for i, bit in enumerate(bits))
            U[b2, b] = 1.0
        return U

    outs = []
    for xi in x:
        psi = np.zeros(16, dtype=complex)
        psi[0] = 1.0
        for i in range(4):
            psi = single(rx(xi[i]), i) @ psi
        for i in range(4):
            psi = single(ry(w[0, i]), i) @ psi
        for (c, t) in [(0, 1), (1, 2), (2, 3), (3, 0)]:
            psi = cnot(c, t) @ psi
        zs = []
        for i in range(4):
            Z = single(np.diag([1.0, -1.0]), i)
            zs.append(float(np.real(np.vdot(psi, Z @ psi))))
        outs.append(zs)
    return np.array(outs, dtype=np.float32)


if __name__ == "__main__":
    key = jax.random.PRNGKey(0)
    kx, kw, kx2 = jax.random.split(key, 3)

    # Small case: exact match against the statevector simulator.
    B = 8
    x = jax.random.normal(kx, (B, 4), dtype=jnp.float32)
    # deterministic stand-in for nn.Parameter(torch.randn(defining_layers=1, 4))
    weights = jax.random.normal(kw, (1, 4), dtype=jnp.float32)

    out = jax.block_until_ready(quantum_layer(x, weights))
    ref = _ref_quantum(np.asarray(x, np.float64), np.asarray(weights, np.float64))
    assert out.shape == (B, 4) and out.dtype == jnp.float32
    assert np.allclose(np.asarray(out), ref, atol=1e-5), (np.asarray(out), ref)

    # Non-multiple-of-32 batch with a small block: exercises padding and the
    # multi-step pipelined ("parallel") grid. Checked against the closed form.
    B2 = 1000
    x2 = jax.random.normal(kx2, (B2, 4), dtype=jnp.float32)
    out2 = jax.block_until_ready(quantum_layer(x2, weights, block_rows=8))
    zn = np.cos(np.asarray(x2, np.float64)) * np.cos(np.asarray(weights, np.float64))
    ref2 = np.stack([zn[:, 1] * zn[:, 2] * zn[:, 3],
                     zn[:, 0] * zn[:, 1],
                     zn[:, 0] * zn[:, 1] * zn[:, 2],
                     zn[:, 0] * zn[:, 1] * zn[:, 2] * zn[:, 3]], axis=-1)
    assert out2.shape == (B2, 4)
    assert np.allclose(np.asarray(out2), ref2.astype(np.float32), atol=1e-5)

    print("KERNEL_OK")
</pallas_src>

<mosaic_0001>
module attributes {stable_mosaic.version = 11 : i64} {
  func.func @quantum_layer_kernel(%arg0: i32, %arg1: memref<8x128xf32, #tpu.memory_space<vmem>>, %arg2: memref<1x128xf32, #tpu.memory_space<vmem>>, %arg3: memref<8x128xf32, #tpu.memory_space<vmem>>) attributes {dimension_semantics = [#tpu.dimension_semantics<parallel>], iteration_bounds = array<i64: 1>, scalar_prefetch = 0 : i64, scratch_operands = 0 : i64, tpu.core_type = #tpu.core_type<tc>, window_params = [{transform_indices = @transform_0, window_bounds = array<i64: 8, 128>}, {pipeline_mode = #tpu.pipeline_mode<synchronous>, transform_indices = @transform_1, window_bounds = array<i64: 1, 128>}, {transform_indices = @transform_2, window_bounds = array<i64: 8, 128>}]} {
    %c0 = arith.constant 0 : index
    %c0_0 = arith.constant 0 : index
    %0 = vector.load %arg1[%c0, %c0_0] : memref<8x128xf32, #tpu.memory_space<vmem>>, vector<8x128xf32>
    %1 = math.cos %0 : vector<8x128xf32>
    %c0_1 = arith.constant 0 : index
    %c0_2 = arith.constant 0 : index
    %2 = vector.load %arg2[%c0_1, %c0_2] : memref<1x128xf32, #tpu.memory_space<vmem>>, vector<1x128xf32>
    %3 = vector.broadcast %2 : vector<1x128xf32> to vector<8x128xf32>
    %4 = arith.mulf %1, %3 : vector<8x128xf32>
    %c1_i32 = arith.constant 1 : i32
    %5 = tpu.dynamic_rotate %4 by %c1_i32 dim 1 : vector<8x128xf32>, i32 -> vector<8x128xf32>
    %c2_i32 = arith.constant 2 : i32
    %6 = tpu.dynamic_rotate %4 by %c2_i32 dim 1 : vector<8x128xf32>, i32 -> vector<8x128xf32>
    %7 = arith.mulf %4, %5 : vector<8x128xf32>
    %8 = arith.mulf %7, %6 : vector<8x128xf32>
    %c2_i32_3 = arith.constant 2 : i32
    %9 = tpu.dynamic_rotate %7 by %c2_i32_3 dim 1 : vector<8x128xf32>, i32 -> vector<8x128xf32>
    %10 = arith.mulf %7, %9 : vector<8x128xf32>
    %c125_i32 = arith.constant 125 : i32
    %11 = tpu.dynamic_rotate %8 by %c125_i32 dim 1 : vector<8x128xf32>, i32 -> vector<8x128xf32>
    %12 = tpu.iota {dimensions = array<i32: 1>} : vector<1x128xi32>
    %c3_i32 = arith.constant 3 : i32
    %13 = vector.broadcast %c3_i32 : i32 to vector<1x128xi32>
    %14 = arith.andi %12, %13 : vector<1x128xi32>
    %c0_i32 = arith.constant 0 : i32
    %15 = vector.broadcast %c0_i32 : i32 to vector<1x128xi32>
    %16 = arith.cmpi eq, %14, %15 : vector<1x128xi32>
    %17 = arith.extui %16 : vector<1x128xi1> to vector<1x128xi32>
    %18 = arith.sitofp %17 : vector<1x128xi32> to vector<1x128xf32>
    %c1_i32_4 = arith.constant 1 : i32
    %19 = vector.broadcast %c1_i32_4 : i32 to vector<1x128xi32>
    %20 = arith.cmpi eq, %14, %19 : vector<1x128xi32>
    %21 = arith.extui %20 : vector<1x128xi1> to vector<1x128xi32>
    %22 = arith.sitofp %21 : vector<1x128xi32> to vector<1x128xf32>
    %c2_i32_5 = arith.constant 2 : i32
    %23 = vector.broadcast %c2_i32_5 : i32 to vector<1x128xi32>
    %24 = arith.cmpi eq, %14, %23 : vector<1x128xi32>
    %25 = arith.extui %24 : vector<1x128xi1> to vector<1x128xi32>
    %26 = arith.sitofp %25 : vector<1x128xi32> to vector<1x128xf32>
    %c3_i32_6 = arith.constant 3 : i32
    %27 = vector.broadcast %c3_i32_6 : i32 to vector<1x128xi32>
    %28 = arith.cmpi eq, %14, %27 : vector<1x128xi32>
    %29 = arith.extui %28 : vector<1x128xi1> to vector<1x128xi32>
    %30 = arith.sitofp %29 : vector<1x128xi32> to vector<1x128xf32>
    %31 = vector.broadcast %18 : vector<1x128xf32> to vector<8x128xf32>
    %32 = arith.mulf %11, %31 : vector<8x128xf32>
    %33 = vector.broadcast %22 : vector<1x128xf32> to vector<8x128xf32>
    %34 = arith.mulf %7, %33 : vector<8x128xf32>
    %35 = arith.addf %32, %34 : vector<8x128xf32>
    %36 = vector.broadcast %26 : vector<1x128xf32> to vector<8x128xf32>
    %37 = arith.mulf %8, %36 : vector<8x128xf32>
    %38 = arith.addf %35, %37 : vector<8x128xf32>
    %39 = vector.broadcast %30 : vector<1x128xf32> to vector<8x128xf32>
    %40 = arith.mulf %10, %39 : vector<8x128xf32>
    %41 = arith.addf %38, %40 : vector<8x128xf32>
    %c0_7 = arith.constant 0 : index
    %c0_8 = arith.constant 0 : index
    %42 = vector.load %arg3[%c0_7, %c0_8] : memref<8x128xf32, #tpu.memory_space<vmem>>, vector<8x128xf32>
    tpu.vector_store %arg3[%c0_7, %c0_8], %41 {strides = array<i32>} : memref<8x128xf32, #tpu.memory_space<vmem>>, vector<8x128xf32>,
    return
  }
  func.func @transform_0(%arg0: i32) -> (i32, i32) {
    %c0_i32 = arith.constant 0 : i32
    %c0_i32_0 = arith.constant 0 : i32
    return %arg0, %c0_i32 : i32, i32
  }
  func.func @transform_1(%arg0: i32) -> (i32, i32) {
    %c0_i32 = arith.constant 0 : i32
    %c0_i32_0 = arith.constant 0 : i32
    %c0_i32_1 = arith.constant 0 : i32
    return %c0_i32, %c0_i32_0 : i32, i32
  }
  func.func @transform_2(%arg0: i32) -> (i32, i32) {
    %c0_i32 = arith.constant 0 : i32
    %c0_i32_0 = arith.constant 0 : i32
    return %arg0, %c0_i32 : i32, i32
  }
}

</mosaic_0001>

<bundles_post_ra>
// kernel: tpu_custom_call.1
= control target key start
LH: loop header
LB: loop body
LE: loop exit
PB: predicated region body
PF: predicated region fallthrough
CT: control target
= control target key end

     0   :  { %7 = vsyncpa [#allocation3], 0  ;;  %s444_s0 = inlined_call_operand.hbm [shape: f32[8,128], index: 0, kind: input, shape index: {}]   ;;  %s445_s1 = inlined_call_operand.hbm [shape: f32[1,128], index: 1, kind: input, shape index: {}]   ;;  %s446_s2 = inlined_call_operand.hbm [shape: f32[8,128], index: 2, kind: output, shape index: {}]  }
   0x1   :  { %8 = vsyncpa [#allocation6], 0 }
   0x2   :  { %9 = vsyncpa [#allocation4], 0  ;;  %s15_s11 = sshll.u32 %s444_s0, 4  ;;  %s352_s12 = smov [#allocation2]   ;;  %s16_s11 = int_to_ptr.hbm [resolvable:$true] %s15_s11 }
   0x3   :  { %s17_s13 = sshll.u32 %s352_s12, 4  ;;  %s26_s16 = sshll.u32 %s445_s1, 4  ;;  %s18_s13 = int_to_ptr.vmem [resolvable:$true] %s17_s13  ;;  %s27_s16 = int_to_ptr.hbm [resolvable:$true] %s26_s16 }
   0x4   :  { %20 = dma.hbm_to_vmem [thread:$0]  %s16_s11, 128, %s18_s13, [#allocation3]  }
   0x5   :  { %s353_s17 = smov [#allocation5]  }
   0x6   :  { %s28_s18 = sshll.u32 %s353_s17, 4  ;;  %s29_s18 = int_to_ptr.vmem [resolvable:$true] %s28_s18 }
   0x7   :  { %31 = dma.hbm_to_vmem [thread:$0]  %s27_s16, 16, %s29_s18, [#allocation6]  }
   0x8   :  { %346 = dma.done.wait [#allocation3], 128  }
   0x9   :  { %347 = vsyncadd [#allocation3], 4294967168 }
   0xa   :  { %348 = dma.done.wait [#allocation6], 16  }
   0xb   :  { %349 = vsyncadd [#allocation6], 4294967280  ;;  %v387_v0 = vld [vmem:[#allocation2] sm:$0xff]  ;;  %v354_v12 = vmov 683565275   ;;  %s361_s0 = smov 1  }
   0xc   :  { %v44_v1 = vand.u32 2139095040, %v387_v0  ;;  %v41_v3 = vand.u32 2147483647, %v387_v0  ;;  %v355_v14 = vmov 2475754826   ;;  %vm43_vm12 = vcmp.lt.s32.totalorder %v387_v0, 0 }
   0xd   :  { %v356_v16 = vmov 2131351028   ;;  %v357_v18 = vmov 2102212464   ;;  %v358_v20 = vmov 920167782  }
   0xe   :  { %v45_v2 = vshrl.u32 %v44_v1, 23  ;;  %v48_v6 = vand.u32 8388607, %v41_v3  ;;  %v359_v26 = vmov 1326507024   ;;  %v360_v1 = vmov 0  }
   0xf   :  { %vm431_vm13 = vcmp.le.f32.partialorder %v41_v3, 0.7853982  ;;  %s362_s1 = smov 2   ;;  %s363_s19 = smov 125  }
  0x10   :  { %v252_v4 = vadd.s32 4294967169, %v45_v2  ;;  %v49_v9 = vor.u32 8388608, %v48_v6  ;;  %s365_s20 = smov [#allocation7]   ;;  %s241_s24 = sshll.u32 %s446_s2, 4  ;;  %s242_s24 = int_to_ptr.hbm [resolvable:$true] %s241_s24 }
  0x11   :  { %s239_s21 = sshll.u32 %s365_s20, 4  ;;  %s240_s21 = int_to_ptr.vmem [resolvable:$true] %s239_s21 }
  0x12   :  { %v51_v5 = vadd.s32 1, %v252_v4  ;;  %v396_v28 = vshll.u32 %v49_v9, 8 }
  0x14   :  { %vm52_vm0 = vcmp.gt.s32.totalorder %v51_v5, 0  ;;  %v90_v40 = vand.u32 65535, %v396_v28  ;;  %v91_v41 = vshrl.u32 %v396_v28, 16 }
  0x15   :  { %v53_v7 = vsel %vm52_vm0, %v51_v5, 0 }
  0x16   :  { %v55_v8 = vand.u32 31, %v53_v7  ;;  %v393_v10 = vshrl.u32 %v53_v7, 5 }
  0x18   :  { %v56_v11 = vsub.s32 32, %v55_v8  ;;  %v58_v13 = vshll.u32 %v354_v12, %v55_v8  ;;  %v61_v15 = vshll.u32 %v355_v14, %v55_v8  ;;  %v64_v17 = vshll.u32 %v356_v16, %v55_v8 }
  0x19   :  { %v67_v19 = vshll.u32 %v357_v18, %v55_v8  ;;  %v70_v21 = vshll.u32 %v358_v20, %v55_v8  ;;  %vm73_vm1 = vcmp.lt.s32.totalorder %v393_v10, 1  ;;  %vm76_vm2 = vcmp.lt.s32.totalorder %v393_v10, 4 }
  0x1a   :  { %v59_v22 = vshrl.u32 %v355_v14, %v56_v11  ;;  %v62_v23 = vshrl.u32 %v356_v16, %v56_v11  ;;  %v65_v24 = vshrl.u32 %v357_v18, %v56_v11  ;;  %v68_v25 = vshrl.u32 %v358_v20, %v56_v11 }
  0x1b   :  { %v71_v27 = vshrl.u32 %v359_v26, %v56_v11  ;;  %vm75_vm3 = vcmp.lt.s32.totalorder %v393_v10, 3  ;;  %vm74_vm4 = vcmp.lt.s32.totalorder %v393_v10, 2  ;;  %v57_v48 = vshrl.u32 %v354_v12, %v56_v11 }
  0x1c   :  { %v60_v29 = vor.u32 %v59_v22, %v58_v13  ;;  %v63_v30 = vor.u32 %v62_v23, %v61_v15  ;;  %v66_v31 = vor.u32 %v65_v24, %v64_v17  ;;  %v69_v32 = vor.u32 %v68_v25, %v67_v19 }
  0x1d   :  { %v72_v33 = vor.u32 %v71_v27, %v70_v21 }
  0x1e   :  { %v81_v34 = vsel %vm73_vm1, %v60_v29, %v63_v30  ;;  %v85_v35 = vsel %vm73_vm1, %v63_v30, %v66_v31  ;;  %v82_v36 = vsel %vm76_vm2, %v69_v32, 920167782  ;;  %v77_v61 = vsel %vm73_vm1, %v57_v48, %v60_v29 }
  0x1f   :  { %v86_v37 = vsel %vm76_vm2, %v72_v33, 1326507024  ;;  %v83_v38 = vsel %vm75_vm3, %v66_v31, %v82_v36  ;;  %v78_v63 = vsel %vm76_vm2, %v66_v31, 2102212464  ;;  %vm184_vm1 = vweird.f32 %v387_v0 }
  0x20   :  { %v87_v39 = vsel %vm75_vm3, %v69_v32, %v86_v37  ;;  %v84_v42 = vsel %vm74_vm4, %v81_v34, %v83_v38  ;;  %v79_v12 = vsel %vm75_vm3, %v63_v30, %v78_v63 }
  0x21   :  { %v88_v43 = vsel %vm74_vm4, %v85_v35, %v87_v39  ;;  %v114_v46 = vand.u32 65535, %v84_v42  ;;  %v115_v47 = vshrl.u32 %v84_v42, 16  ;;  %v80_v20 = vsel %vm74_vm4, %v77_v61, %v79_v12 }
  0x22   :  { %v92_v44 = vand.u32 65535, %v88_v43  ;;  %v93_v45 = vshrl.u32 %v88_v43, 16  ;;  %v134_v24 = vmul.u32 %v396_v28, %v80_v20  ;;  %v211_v20 = vlaneseq }
  0x23   :  { %v116_v52 = vmul.u32 %v114_v46, %v90_v40  ;;  %v117_v53 = vmul.u32 %v115_v47, %v90_v40  ;;  %v118_v54 = vmul.u32 %v114_v46, %v91_v41  ;;  %v119_v58 = vmul.u32 %v115_v47, %v91_v41 }
  0x24   :  { %v94_v49 = vmul.u32 %v92_v44, %v90_v40  ;;  %v95_v50 = vmul.u32 %v93_v45, %v90_v40  ;;  %v96_v51 = vmul.u32 %v92_v44, %v91_v41  ;;  %v97_v55 = vmul.u32 %v93_v45, %v91_v41 }
  0x25   :  { %v120_v59 = vshll.u32 %v117_v53, 16  ;;  %v122_v60 = vshll.u32 %v118_v54, 16  ;;  %v121_v9 = vshrl.u32 %v117_v53, 16  ;;  %v123_v16 = vshrl.u32 %v118_v54, 16 }
  0x26   :  { %v98_v56 = vshll.u32 %v95_v50, 16  ;;  %v100_v57 = vshll.u32 %v96_v51, 16  ;;  %v99_v5 = vshrl.u32 %v95_v50, 16  ;;  %v101_v13 = vshrl.u32 %v96_v51, 16 }
  0x27   :  { %vm124_vm6 = vc.u32 %v116_v52, %v120_v59  ;;  %v126_v4 = vadd.s32 %v120_v59, %v116_v52 }
  0x28   :  { %vm102_vm5 = vc.u32 %v94_v49, %v98_v56  ;;  %v104_v62 = vadd.s32 %v98_v56, %v94_v49  ;;  %v125_v7 = vsel %vm124_vm6, 1, %v360_v1 }
  0x29   :  { %v103_v2 = vsel %vm102_vm5, 1, %v360_v1  ;;  %v127_v11 = vadd.s32 %v125_v7, %v119_v58  ;;  %vm128_vm8 = vc.u32 %v126_v4, %v122_v60  ;;  %v130_v19 = vadd.s32 %v126_v4, %v122_v60 }
  0x2a   :  { %v105_v6 = vadd.s32 %v103_v2, %v97_v55  ;;  %vm106_vm7 = vc.u32 %v104_v62, %v100_v57  ;;  %v129_v15 = vsel %vm128_vm8, 1, %v360_v1 }
  0x2b   :  { %v107_v8 = vsel %vm106_vm7, 1, %v360_v1  ;;  %v131_v17 = vadd.s32 %v129_v15, %v127_v11  ;;  %v273_v11 = vld [vmem:[#allocation5] ss:$0 sm:$0xff] }
  0x2c   :  { %v109_v14 = vadd.s32 %v107_v8, %v105_v6 }
  0x2d   :  { %v132_v21 = vadd.s32 %v131_v17, %v121_v9 }
  0x2e   :  { %v110_v18 = vadd.s32 %v109_v14, %v99_v5 }
  0x2f   :  { %v133_v23 = vadd.s32 %v132_v21, %v123_v16  ;;  %v212_v21 = vand.u32 127, %v211_v20 }
  0x30   :  { %v111_v22 = vadd.s32 %v110_v18, %v101_v13 }
  0x31   :  { %v137_v25 = vadd.s32 1, %v133_v23 }
  0x32   :  { %vm136_vm9 = vc.u32 %v111_v22, %v130_v19  ;;  %v135_v10 = vadd.s32 %v130_v19, %v111_v22  ;;  %v213_v22 = vand.u32 3, %v212_v21 }
  0x33   :  { %v138_v26 = vsel %vm136_vm9, %v137_v25, %v133_v23 }
  0x34   :  { %v139_v27 = vadd.s32 %v138_v26, %v134_v24  ;;  %vm214_vm2 = vcmp.eq.s32.totalorder %v213_v22, 0  ;;  %vm217_vm3 = vcmp.eq.s32.totalorder %v213_v22, 1  ;;  %vm220_vm4 = vcmp.eq.s32.totalorder %v213_v22, 2 }
  0x35   :  { %vm223_vm5 = vcmp.eq.s32.totalorder %v213_v22, 3 }
  0x36   :  { %v140_v29 = vadd.s32 536870912, %v139_v27 }
  0x38   :  { %v141_v30 = vshrl.u32 %v140_v29, 30 }
  0x3a   :  { %v142_v31 = vshll.u32 %v141_v30, 30  ;;  %v165_v51 = vsub.s32 4, %v141_v30 }
  0x3c   :  { %v143_v32 = vsub.s32 %v139_v27, %v142_v31  ;;  %v166_v56 = vsel %vm43_vm12, %v165_v51, %v141_v30 }
  0x3d   :  { %v168_v59 = vsel %vm431_vm13, 0, %v166_v56 }
  0x3e   :  { %vm144_vm10 = vcmp.lt.s32.totalorder %v143_v32, 0  ;;  %v145_v33 = vsub.s32 0, %v143_v32  ;;  %v185_v63 = vand.u32 3, %v168_v59 }
  0x40   :  { %v146_v34 = vsel %vm144_vm10, %v145_v33, %v143_v32  ;;  %vm190_vm14 = vcmp.eq.s32.totalorder %v185_v63, 2  ;;  %vm187_vm15 = vcmp.eq.s32.totalorder %v185_v63, 0  ;;  %vm186_vm0 = vcmp.lt.s32.totalorder %v185_v63, 2 }
  0x41   :  { %v147_v35 = vclz %v146_v34 }
  0x43   :  { %v253_v36 = vadd.s32 4294967294, %v147_v35 }
  0x45   :  { %vm254_vm11 = vcmp.lt.s32.totalorder %v253_v36, 0 }
  0x46   :  { %v150_v37 = vsel %vm254_vm11, 0, %v253_v36 }
  0x47   :  { %v151_v38 = vsub.s32 32, %v150_v37  ;;  %v152_v39 = vshll.u32 %v143_v32, %v150_v37  ;;  %v155_v40 = vsub.s32 4294967266, %v150_v37 }
  0x49   :  { %v153_v28 = vshrl.u32 %v135_v10, %v151_v38  ;;  %v156_v41 = vadd.s32 127, %v155_v40 }
  0x4b   :  { %v154_v42 = vor.u32 %v153_v28, %v152_v39  ;;  %v157_v43 = vshll.u32 %v156_v41, 23 }
  0x4d   :  { %v158_v44 = vor.u32 4788187, %v157_v43  ;;  %v161_v45 = vcvt.s32.f32 %v154_v42 }
  0x4f   :  { %v159_v46 = vand.u32 2147483647, %v158_v44 }
  0x51   :  { %v162_v47 = vmul.f32 %v161_v45, %v159_v46 }
  0x53   :  { %v163_v49 = vxor.u32 2147483648, %v162_v47 }
  0x55   :  { %v164_v50 = vsel %vm43_vm12, %v163_v49, %v162_v47 }
  0x56   :  { %v167_v52 = vsel %vm431_vm13, %v387_v0, %v164_v50  ;;  %v364_v0 = vmov 0.0  }
  0x57   :  { %v169_v53 = vmul.f32 %v167_v52, %v167_v52  ;;  %v255_v23 = vsel %vm214_vm2, 1.0, %v364_v0  ;;  %v256_v25 = vsel %vm217_vm3, 1.0, %v364_v0  ;;  %v257_v29 = vsel %vm220_vm4, 1.0, %v364_v0 }
  0x58   :  { %v258_v31 = vsel %vm223_vm5, 1.0, %v364_v0 }
  0x59   :  { %v170_v54 = vmul.f32 -0.001358992, %v169_v53  ;;  %v177_v55 = vmul.f32 -0.00019511016, %v169_v53 }
  0x5b   :  { %v171_v57 = vadd.f32 0.041655596, %v170_v54  ;;  %v178_v58 = vadd.f32 0.008332121, %v177_v55 }
  0x5d   :  { %v172_v3 = vmul.f32 %v171_v57, %v169_v53  ;;  %v179_v60 = vmul.f32 %v178_v58, %v169_v53 }
  0x5f   :  { %v173_v61 = vadd.f32 -0.4999988, %v172_v3  ;;  %v180_v62 = vadd.f32 -0.16666654, %v179_v60 }
  0x61   :  { %v174_v1 = vmul.f32 %v173_v61, %v169_v53  ;;  %v181_v2 = vmul.f32 %v180_v62, %v169_v53 }
  0x63   :  { %v175_v4 = vadd.f32 1.0, %v174_v1  ;;  %v182_v5 = vadd.f32 1.0, %v181_v2 }
  0x65   :  { %v183_v6 = vmul.f32 %v182_v5, %v167_v52  ;;  %v191_v7 = vxor.u32 2147483648, %v175_v4 }
  0x67   :  { %v188_v8 = vxor.u32 2147483648, %v183_v6  ;;  %v192_v9 = vsel %vm190_vm14, %v191_v7, %v183_v6 }
  0x69   :  { %v189_v12 = vsel %vm187_vm15, %v175_v4, %v188_v8 }
  0x6a   :  { %v193_v13 = vsel %vm186_vm0, %v189_v12, %v192_v9 }
  0x6b   :  { %v194_v14 = vsel %vm184_vm1, nan, %v193_v13 }
  0x6c   :  { %v199_v15 = vmul.f32 %v273_v11, %v194_v14 }
  0x6e   :  { %200 = vrot.lane.b32.xlu0 %v199_v15, %s361_s0 }
  0x76   :  { %202 = vrot.lane.b32.xlu0 %v199_v15, %s362_s1 }
  0xe0   :  { %v201_v16 = vpop.permute.xlu0 %200 }
  0xe1   :  { %v204_v17 = vmul.f32 %v201_v16, %v199_v15 }
  0xe3   :  { %v227_v27 = vmul.f32 %v256_v25, %v204_v17 }
  0xe8   :  { %v203_v18 = vpop.permute.xlu0 %202 }
  0xe9   :  { %v205_v19 = vmul.f32 %v204_v17, %v203_v18 }
  0xeb   :  { %209 = vrot.lane.b32.xlu1 %v205_v19, %s363_s19  ;;  %v229_v33 = vmul.f32 %v257_v29, %v205_v19 }
  0xf3   :  { %206 = vrot.lane.b32.xlu1 %v204_v17, %s362_s1 }
 0x15d   :  { %v210_v24 = vpop.permute.xlu1 %209 }
 0x15e   :  { %v226_v26 = vmul.f32 %v255_v23, %v210_v24 }
 0x160   :  { %v228_v30 = vadd.f32 %v227_v27, %v226_v26 }
 0x162   :  { %v230_v35 = vadd.f32 %v229_v33, %v228_v30 }
 0x165   :  { %v207_v32 = vpop.permute.xlu1 %206 }
 0x166   :  { %v208_v34 = vmul.f32 %v207_v32, %v204_v17 }
 0x168   :  { %v231_v36 = vmul.f32 %v258_v31, %v208_v34 }
 0x16a   :  { %v232_v10 = vadd.f32 %v231_v36, %v230_v35 }
 0x16c   :  { %233 = vst [vmem:[#allocation7] sm:$0xff] %v232_v10 }
 0x16d   :  { %244 = dma.vmem_to_hbm [thread:$0]  %s240_s21, 128, %s242_s24, [#allocation4]  }
 0x16e   :  { %350 = dma.done.wait [#allocation4], 128  }
 0x16f   :  { %351 = vsyncadd [#allocation4], 4294967168 }
 0x170   :  { %249 = vsyncpa [#allocation3], 1 }
 0x171   :  { %250 = vsyncpa [#allocation6], 1 }
 0x172   :  { %251 = vsyncpa [#allocation4], 1 }

</bundles_post_ra>
